<compile_context>
chip_gen: v7x
topology: tpu7x:2x2x1
jax: 0.10.0
libtpu: 0.0.40
codegen_flags: <defaults>
</compile_context>

<pallas_src>
import functools

import jax
import jax.numpy as jnp
import numpy as np
from jax.experimental import pallas as pl
from jax.experimental.pallas import tpu as pltpu

# cfg.demo_dataset.class_num equivalent (synthetic config value)
NUM_CLASSES = 5


def _round_up(x, m):
    return ((x + m - 1) // m) * m


def _target_kernel(feat_ref, out_ref, *, num_classes, point_dim):
    """Majority class over points for one sublane tile of voxels.

    feat_ref : (TV, P*C) float VMEM tile -- flattened point features per voxel
    out_ref  : (TV, 1)   int32 VMEM tile -- winning class per voxel
    """
    feat = feat_ref[...]                                    # (TV, P*C)
    tv, pc = feat.shape

    # Lane mask selecting the class channel (last channel of each point). Built from a
    # tiny (1, pc) iota once per tile, broadcast over sublanes inside the single `where`.
    lane = jax.lax.broadcasted_iota(jnp.int32, (1, pc), 1)
    is_cls_lane = (lane % point_dim) == (point_dim - 1)
    # One select pass: non-class lanes get a sentinel that matches no class id 1..K-1.
    cls = jnp.where(is_cls_lane, feat, -1.0)                # (TV, P*C), feat dtype

    # Running argmax with first-occurrence tie-break; class 0 pinned to count 0
    # (matches `occurance_count = [0]` in the reference).
    best_cnt = jnp.zeros((tv, 1), jnp.int32)
    best_cls = jnp.zeros((tv, 1), jnp.int32)
    for c in range(1, num_classes):
        # Float equality (like torch), then a lane (XLU) reduction over points*channels.
        cnt = jnp.sum((cls == float(c)).astype(jnp.int32), axis=1, keepdims=True)
        take = cnt > best_cnt                               # strict > keeps lowest class on ties
        best_cnt = jnp.where(take, cnt, best_cnt)
        best_cls = jnp.where(take, jnp.int32(c), best_cls)

    out_ref[...] = best_cls


@functools.partial(jax.jit, static_argnames=("num_classes", "voxel_tile"))
def sparse_target(features, *, num_classes=NUM_CLASSES, voxel_tile=None):
    """Pallas wrapper.

    features : (V, P, C) float array; last channel carries the per-point class id.
    returns  : (V, 1) int32 voxel target.
    """
    V, P, C = features.shape
    pc = P * C
    feat2d = features.reshape(V, pc)        # contiguous trailing-dim merge: free (bitcast)

    if voxel_tile is None:
        bytes_per_voxel_row = pc * features.dtype.itemsize
        # ~4 MiB input block: safe under v5e's 16 MiB scoped-VMEM default with double
        # buffering, big enough to amortize per-step overhead on v6e/v7x.
        cap_vmem = max(8, ((4 * 1024 * 1024) // max(bytes_per_voxel_row, 1)) // 8 * 8)
        # Keep >= ~4 grid steps so v7x's two TensorCores both get work and the pipeline
        # has depth; no effect on correctness for single-TC chips.
        tv_for_steps = _round_up(max(1, -(-V // 4)), 8)
        voxel_tile = max(8, min(cap_vmem, tv_for_steps))
    voxel_tile = max(8, _round_up(voxel_tile, 8))

    grid = (pl.cdiv(V, voxel_tile),)
    kernel = functools.partial(_target_kernel, num_classes=num_classes, point_dim=C)

    out = pl.pallas_call(
        kernel,
        out_shape=jax.ShapeDtypeStruct((V, 1), jnp.int32),
        grid_spec=pltpu.PrefetchScalarGridSpec(
            num_scalar_prefetch=0,
            grid=grid,
            in_specs=[pl.BlockSpec((voxel_tile, pc), lambda i: (i, 0))],
            out_specs=pl.BlockSpec((voxel_tile, 1), lambda i: (i, 0)),
        ),
        compiler_params=pltpu.CompilerParams(
            dimension_semantics=("parallel",),   # lets v7x shard grid steps across its 2 TCs
        ),
    )(feat2d)
    return out


def _reference_target(features_np, num_classes=NUM_CLASSES):
    """Pure-numpy re-implementation of the PyTorch forward (ground truth)."""
    out = []
    for i in range(features_np.shape[0]):
        class_num = features_np[i, :, -1]
        counts = [0] + [int((class_num == c).sum()) for c in range(1, num_classes)]
        out.append(counts.index(max(counts)))
    return np.asarray(out, dtype=np.int32).reshape(-1, 1)


if __name__ == "__main__":
    key = jax.random.PRNGKey(0)

    # --- Case 1: lane-dense feature rows (P*C = 256), ragged V vs. the default tile. ---
    V, P, C = 200, 32, 8
    k_feat, k_cls, k2_feat, k2_cls = jax.random.split(key, 4)

    feats = jax.random.normal(k_feat, (V, P, C), dtype=jnp.float32)
    class_ids = jax.random.randint(k_cls, (V, P), 0, NUM_CLASSES).astype(jnp.float32)
    # A couple of non-integer / out-of-range ids to exercise float-equality semantics.
    class_ids = class_ids.at[3, 5].set(2.5)
    class_ids = class_ids.at[7, 0].set(-3.0)
    feats = feats.at[:, :, -1].set(class_ids)

    ref = _reference_target(np.asarray(feats))
    target = jax.block_until_ready(sparse_target(feats))
    assert target.shape == (V, 1), target.shape
    assert target.dtype == jnp.int32
    np.testing.assert_array_equal(np.asarray(target), ref)

    # --- Case 2: P*C not a multiple of 128, explicit small tile (multi-step + ragged tail). ---
    V2, P2, C2 = 75, 12, 5
    feats2 = jax.random.normal(k2_feat, (V2, P2, C2), dtype=jnp.float32)
    class_ids2 = jax.random.randint(k2_cls, (V2, P2), 0, NUM_CLASSES).astype(jnp.float32)
    feats2 = feats2.at[:, :, -1].set(class_ids2)

    ref2 = _reference_target(np.asarray(feats2))
    target2 = jax.block_until_ready(sparse_target(feats2))
    np.testing.assert_array_equal(np.asarray(target2), ref2)

    target2_small = jax.block_until_ready(sparse_target(feats2, voxel_tile=16))
    np.testing.assert_array_equal(np.asarray(target2_small), ref2)

    print("KERNEL_OK")
</pallas_src>

<mosaic_0001>
module attributes {stable_mosaic.version = 11 : i64} {
  func.func @_target_kernel(%arg0: i32, %arg1: memref<56x256xf32, #tpu.memory_space<vmem>>, %arg2: memref<56x1xi32, #tpu.memory_space<vmem>>) attributes {dimension_semantics = [#tpu.dimension_semantics<parallel>], iteration_bounds = array<i64: 4>, scalar_prefetch = 0 : i64, scratch_operands = 0 : i64, tpu.core_type = #tpu.core_type<tc>, window_params = [{transform_indices = @transform_0, window_bounds = array<i64: 56, 256>}, {transform_indices = @transform_1, window_bounds = array<i64: 56, 1>}]} {
    %c0 = arith.constant 0 : index
    %c0_0 = arith.constant 0 : index
    %0 = vector.load %arg1[%c0, %c0_0] : memref<56x256xf32, #tpu.memory_space<vmem>>, vector<56x256xf32>
    %1 = tpu.iota {dimensions = array<i32: 1>} : vector<1x256xi32>
    %c8_i32 = arith.constant 8 : i32
    %c0_i32 = arith.constant 0 : i32
    %2 = arith.cmpi eq, %c8_i32, %c0_i32 : i32
    %c1_i32 = arith.constant 1 : i32
    %3 = arith.select %2, %c1_i32, %c8_i32 : i32
    %4 = vector.broadcast %3 : i32 to vector<1x256xi32>
    %5 = arith.remsi %1, %4 : vector<1x256xi32>
    %c0_i32_1 = arith.constant 0 : i32
    %6 = vector.broadcast %c0_i32_1 : i32 to vector<1x256xi32>
    %7 = arith.cmpi ne, %5, %6 : vector<1x256xi32>
    %c0_i32_2 = arith.constant 0 : i32
    %8 = vector.broadcast %c0_i32_2 : i32 to vector<1x256xi32>
    %9 = arith.cmpi slt, %5, %8 : vector<1x256xi32>
    %c0_i32_3 = arith.constant 0 : i32
    %10 = arith.cmpi slt, %3, %c0_i32_3 : i32
    %11 = vector.broadcast %10 : i1 to vector<1x256xi1>
    %12 = vector.broadcast %11 : vector<1x256xi1> to vector<1x256xi1>
    %13 = arith.xori %9, %12 : vector<1x256xi1>
    %14 = arith.andi %13, %7 : vector<1x256xi1>
    %15 = vector.broadcast %3 : i32 to vector<1x256xi32>
    %16 = arith.addi %5, %15 : vector<1x256xi32>
    %17 = arith.select %14, %16, %5 : vector<1x256xi1>, vector<1x256xi32>
    %c7_i32 = arith.constant 7 : i32
    %18 = vector.broadcast %c7_i32 : i32 to vector<1x256xi32>
    %19 = arith.cmpi eq, %17, %18 : vector<1x256xi32>
    %cst = arith.constant -1.000000e+00 : f32
    %20 = vector.shape_cast %19 : vector<1x256xi1> to vector<1x256xi1>
    %21 = vector.broadcast %20 : vector<1x256xi1> to vector<56x256xi1>
    %22 = vector.broadcast %cst : f32 to vector<56x256xf32>
    %23 = arith.select %21, %0, %22 : vector<56x256xi1>, vector<56x256xf32>
    %c0_i32_4 = arith.constant 0 : i32
    %24 = vector.broadcast %c0_i32_4 : i32 to vector<56x1xi32>
    %c0_i32_5 = arith.constant 0 : i32
    %25 = vector.broadcast %c0_i32_5 : i32 to vector<56x1xi32>
    %cst_6 = arith.constant 1.000000e+00 : f32
    %26 = vector.broadcast %cst_6 : f32 to vector<56x256xf32>
    %27 = arith.cmpf oeq, %23, %26 : vector<56x256xf32>
    %28 = arith.extui %27 : vector<56x256xi1> to vector<56x256xi32>
    %cst_7 = arith.constant dense<0> : vector<56xi32>
    %29 = vector.multi_reduction <add>, %28, %cst_7 [1] : vector<56x256xi32> to vector<56xi32>
    %30 = vector.shape_cast %29 : vector<56xi32> to vector<56x1xi32>
    %31 = arith.cmpi sgt, %30, %24 : vector<56x1xi32>
    %32 = arith.select %31, %30, %24 : vector<56x1xi1>, vector<56x1xi32>
    %c1_i32_8 = arith.constant 1 : i32
    %33 = vector.broadcast %c1_i32_8 : i32 to vector<56x1xi32>
    %34 = arith.select %31, %33, %25 : vector<56x1xi1>, vector<56x1xi32>
    %cst_9 = arith.constant 2.000000e+00 : f32
    %35 = vector.broadcast %cst_9 : f32 to vector<56x256xf32>
    %36 = arith.cmpf oeq, %23, %35 : vector<56x256xf32>
    %37 = arith.extui %36 : vector<56x256xi1> to vector<56x256xi32>
    %cst_10 = arith.constant dense<0> : vector<56xi32>
    %38 = vector.multi_reduction <add>, %37, %cst_10 [1] : vector<56x256xi32> to vector<56xi32>
    %39 = vector.shape_cast %38 : vector<56xi32> to vector<56x1xi32>
    %40 = arith.cmpi sgt, %39, %32 : vector<56x1xi32>
    %41 = arith.select %40, %39, %32 : vector<56x1xi1>, vector<56x1xi32>
    %c2_i32 = arith.constant 2 : i32
    %42 = vector.broadcast %c2_i32 : i32 to vector<56x1xi32>
    %43 = arith.select %40, %42, %34 : vector<56x1xi1>, vector<56x1xi32>
    %cst_11 = arith.constant 3.000000e+00 : f32
    %44 = vector.broadcast %cst_11 : f32 to vector<56x256xf32>
    %45 = arith.cmpf oeq, %23, %44 : vector<56x256xf32>
    %46 = arith.extui %45 : vector<56x256xi1> to vector<56x256xi32>
    %cst_12 = arith.constant dense<0> : vector<56xi32>
    %47 = vector.multi_reduction <add>, %46, %cst_12 [1] : vector<56x256xi32> to vector<56xi32>
    %48 = vector.shape_cast %47 : vector<56xi32> to vector<56x1xi32>
    %49 = arith.cmpi sgt, %48, %41 : vector<56x1xi32>
    %50 = arith.select %49, %48, %41 : vector<56x1xi1>, vector<56x1xi32>
    %c3_i32 = arith.constant 3 : i32
    %51 = vector.broadcast %c3_i32 : i32 to vector<56x1xi32>
    %52 = arith.select %49, %51, %43 : vector<56x1xi1>, vector<56x1xi32>
    %cst_13 = arith.constant 4.000000e+00 : f32
    %53 = vector.broadcast %cst_13 : f32 to vector<56x256xf32>
    %54 = arith.cmpf oeq, %23, %53 : vector<56x256xf32>
    %55 = arith.extui %54 : vector<56x256xi1> to vector<56x256xi32>
    %cst_14 = arith.constant dense<0> : vector<56xi32>
    %56 = vector.multi_reduction <add>, %55, %cst_14 [1] : vector<56x256xi32> to vector<56xi32>
    %57 = vector.shape_cast %56 : vector<56xi32> to vector<56x1xi32>
    %58 = arith.cmpi sgt, %57, %50 : vector<56x1xi32>
    %c4_i32 = arith.constant 4 : i32
    %59 = vector.broadcast %c4_i32 : i32 to vector<56x1xi32>
    %60 = arith.select %58, %59, %52 : vector<56x1xi1>, vector<56x1xi32>
    %c0_15 = arith.constant 0 : index
    %c0_16 = arith.constant 0 : index
    %61 = vector.load %arg2[%c0_15, %c0_16] : memref<56x1xi32, #tpu.memory_space<vmem>>, vector<56x1xi32>
    tpu.vector_store %arg2[%c0_15, %c0_16], %60 {strides = array<i32>} : memref<56x1xi32, #tpu.memory_space<vmem>>, vector<56x1xi32>,
    return
  }
  func.func @transform_0(%arg0: i32) -> (i32, i32) {
    %c0_i32 = arith.constant 0 : i32
    %c0_i32_0 = arith.constant 0 : i32
    return %arg0, %c0_i32 : i32, i32
  }
  func.func @transform_1(%arg0: i32) -> (i32, i32) {
    %c0_i32 = arith.constant 0 : i32
    %c0_i32_0 = arith.constant 0 : i32
    return %arg0, %c0_i32 : i32, i32
  }
}

</mosaic_0001>

<bundles_post_ra>
// kernel: sparse_target.1
= control target key start
LH: loop header
LB: loop body
LE: loop exit
PB: predicated region body
PF: predicated region fallthrough
CT: control target
= control target key end

     0   :  { %s1223_s6 = smov 0   ;;  %s1225_s7 = smov 0   ;;  %s1766_s0 = inlined_call_operand.vmem [shape: f32[200,256], index: 0, kind: input, shape index: {}]   ;;  %s1767_s1 = inlined_call_operand.vmem [shape: s32[200,1], index: 1, kind: output, shape index: {}]  }
   0x1   :  { %s1227_s8 = smov 0  }
   0x2 LB: > { %s1236_s9 = sadd.s32 4294967295, %s1178_s8   ;;  %s1238_s10 = sadd.s32 1, %s1178_s8   ;;  %s1178_s8 = sphi %s1227_s8, %s1778_s8   ;;  %s1174_s7 = sphi %s1225_s7, %s1777_s7   ;;  %s1170_s6 = sphi %s1223_s6, %s1776_s6  }
   0x3   : > { %s41_s11 = ssub.s32 %s1178_s8, %s1238_s10  ;;  %s44_s12 = sadd.s32 1, %s1174_s7 }
   0x4   : > { %p42_p0 = scmp.eq.s32.totalorder %s41_s11, 0  ;;  %p54_p1 = scmp.ne.s32.totalorder %s1174_s7, %s1170_s6 }
   0x5   : > { %p55_p2 = scmp.eq.s32.totalorder %s1236_s9, 3  ;;  %p1012_p3 = scmp.ge.s32.totalorder %s1178_s8, 1 }
   0x6   : > { %s1246_s13 = scalar_select %p42_p0, %s1174_s7, %s44_s12  }
   0x7   : > { %p1248_p4 = por %p55_p2, %p54_p1  ;;  %p99_p5 = scmp.lt.s32.totalorder %s1178_s8, 5 }
   0x9   : > { %p100_p6 = pnand %p1012_p3, %p99_p5 }
   0xa   : > { %s1253_s15 = smul.u32 (!%p100_p6), 7, %s1236_s9  ;;  %v160_v0 = vlaneseq (!%p100_p6)  ;;  %v1212_v18 = vmov (!%p100_p6), 0   ;;  %s121_s21 = sand.u32 (!%p100_p6), 1, %s1170_s6  }
   0xb   : > { %103 = sbr.rel (%p100_p6) target bundleno = 351 (0x15f), region = 24 }
   0xc   : > { %p130_p7 = scmp.lt.s32.totalorder (!%p100_p6), %s1253_s15, 24  ;;  %v161_v1 = vand.u32 (!%p100_p6), 127, %v160_v0  ;;  %s1029_s22 = smul.u32 (!%p100_p6), 56, %s121_s21 }
   0xe   : > { %v162_v2 = vadd.s32 (!%p100_p6), 128, %v161_v1  ;;  %v167_v3 = vand.u32 (!%p100_p6), 7, %v161_v1  ;;  %s1656_s23 = scalar_lea.vmem (!%p100_p6), [#allocation2], %s1029_s22  }
  0x10   : > { %v174_v4 = vand.u32 (!%p100_p6), 7, %v162_v2  ;;  %vm1257_vm0 = vcmp.eq.s32.totalorder (!%p100_p6), %v167_v3, 7 }
  0x12   : > { %s131_s16 = scalar_select %p130_p7, %s1253_s15, 24  ;;  %vm1268_vm1 = vcmp.eq.s32.totalorder %v174_v4, 7 }
  0x13   : > { %s776_s24 = ssub.s32 (%p1248_p4), 25, %s1253_s15  ;;  %s1028_s25 = smul.u32 (%p1248_p4), 56, %s1236_s9 }
  0x14   : > { %s1027_s17 = sshll.u32 %s131_s16, 4  ;;  %p777_p8 = scmp.lt.s32.totalorder (%p1248_p4), %s776_s24, 7 }
  0x15   : > { %s1264_s20 = scalar_lea.vmem %s1766_s0, %s1027_s17  ;;  %s1717_s28 = scalar_lea.vmem (%p1248_p4), %s1767_s1, %s1028_s25  }
  0x16   : > { %v148_v6 = vld [vmem:[%s1264_s20 + $0x10] sm:$0xff]  ;;  %v149_v7 = vld [vmem:[%s1264_s20 + $0x18] sm:$0xff]  ;;  %v146_v9 = vld [vmem:[%s1264_s20] sm:$0xff] }
  0x17   : > { %v1275_v10 = vsel %vm1257_vm0, %v148_v6, -1.0  ;;  %v1279_v11 = vsel %vm1268_vm1, %v149_v7, -1.0  ;;  %v147_v12 = vld [vmem:[%s1264_s20 + $0x8] sm:$0xff]  ;;  %v1284_v13 = vsel %vm1257_vm0, %v146_v9, -1.0  ;;  %v150_v14 = vld [vmem:[%s1264_s20 + $0x20] sm:$0xff]  ;;  %v152_v17 = vld [vmem:[%s1264_s20 + $0x30] sm:$0xff] }
  0x18   : > { %v151_v15 = vld [vmem:[%s1264_s20 + $0x28] sm:$0xff]  ;;  %vm209_vm2 = vcmp.eq.f32.partialorder %v1275_v10, 1.0  ;;  %vm210_vm3 = vcmp.eq.f32.partialorder %v1279_v11, 1.0  ;;  %v1292_v16 = vsel %vm1268_vm1, %v147_v12, -1.0  ;;  %vm207_vm4 = vcmp.eq.f32.partialorder %v1284_v13, 1.0  ;;  %v153_v26 = vld [vmem:[%s1264_s20 + $0x38] sm:$0xff] }
  0x19   : > { %v223_v19 = vsel %vm209_vm2, 1, %v1212_v18  ;;  %v224_v20 = vsel %vm210_vm3, 1, %v1212_v18  ;;  %vm208_vm5 = vcmp.eq.f32.partialorder %v1292_v16, 1.0  ;;  %v221_v21 = vsel %vm207_vm4, 1, %v1212_v18  ;;  %v154_v37 = vld [vmem:[%s1264_s20 + $0x40] sm:$0xff]  ;;  %v155_v38 = vld [vmem:[%s1264_s20 + $0x48] sm:$0xff] }
  0x1a   : > { %v248_v22 = vadd.s32 %v224_v20, %v223_v19  ;;  %v222_v23 = vsel %vm208_vm5, 1, %v1212_v18  ;;  %v1303_v24 = vsel %vm1257_vm0, %v150_v14, -1.0  ;;  %v1307_v25 = vsel %vm1268_vm1, %v151_v15, -1.0  ;;  %v156_v44 = vld [vmem:[%s1264_s20 + $0x50] sm:$0xff]  ;;  %v157_v45 = vld [vmem:[%s1264_s20 + $0x58] sm:$0xff]  ;;  %v158_v52 = vld [vmem:[%s1264_s20 + $0x60] sm:$0xff] }
  0x1b   : > { %v235_v27 = vadd.s32 %v222_v23, %v221_v21  ;;  %vm211_vm6 = vcmp.eq.f32.partialorder %v1303_v24, 1.0  ;;  %vm212_vm7 = vcmp.eq.f32.partialorder %v1307_v25, 1.0  ;;  %v1314_v28 = vsel %vm1257_vm0, %v152_v17, -1.0  ;;  %v159_v56 = vld [vmem:[%s1264_s20 + $0x68] sm:$0xff] }
  0x1c   : > { %v249_v29 = vand.u32 65535, %v248_v22  ;;  %v250_v30 = vshrl.u32 %v248_v22, 16  ;;  %v225_v31 = vsel %vm211_vm6, 1, %v1212_v18  ;;  %v226_v32 = vsel %vm212_vm7, 1, %v1212_v18 }
  0x1d   : > { %v236_v33 = vand.u32 65535, %v235_v27  ;;  %v237_v34 = vshrl.u32 %v235_v27, 16  ;;  %v261_v35 = vadd.s32 %v226_v32, %v225_v31  ;;  %v1320_v36 = vsel %vm1268_vm1, %v153_v26, -1.0 }
  0x1e   : > { %v251_v39 = vcvt.s32.f32 %v249_v29  ;;  %vm213_vm8 = vcmp.eq.f32.partialorder %v1314_v28, 1.0  ;;  %vm214_vm9 = vcmp.eq.f32.partialorder %v1320_v36, 1.0  ;;  %v252_v41 = vcvt.s32.f32 %v250_v30 }
  0x1f   : > { %v238_v40 = vcvt.s32.f32 %v236_v33  ;;  %v263_v42 = vshrl.u32 %v261_v35, 16  ;;  %v262_v43 = vand.u32 65535, %v261_v35  ;;  %v227_v46 = vsel %vm213_vm8, 1, %v1212_v18 }
  0x20   : > { %253 = vadd.xlane.f32.xlu1 %v251_v39  ;;  %v228_v47 = vsel %vm214_vm9, 1, %v1212_v18  ;;  %v1332_v48 = vsel %vm1257_vm0, %v154_v37, -1.0  ;;  %v1336_v49 = vsel %vm1268_vm1, %v155_v38, -1.0  ;;  %v239_v50 = vcvt.s32.f32 %v237_v34 }
  0x21   : > { %240 = vadd.xlane.f32.xlu0 %v238_v40  ;;  %v274_v51 = vadd.s32 %v228_v47, %v227_v46  ;;  %vm215_vm10 = vcmp.eq.f32.partialorder %v1332_v48, 1.0  ;;  %vm216_vm11 = vcmp.eq.f32.partialorder %v1336_v49, 1.0  ;;  %v1344_v54 = vsel %vm1257_vm0, %v156_v44, -1.0 }
  0x22   : > { %v229_v53 = vsel %vm215_vm10, 1, %v1212_v18  ;;  %v1348_v55 = vsel %vm1268_vm1, %v157_v45, -1.0  ;;  %v265_v57 = vcvt.s32.f32 %v263_v42  ;;  %v264_v58 = vcvt.s32.f32 %v262_v43 }
  0x23   : > { %v230_v59 = vsel %vm216_vm11, 1, %v1212_v18  ;;  %vm217_vm12 = vcmp.eq.f32.partialorder %v1344_v54, 1.0  ;;  %v276_v60 = vshrl.u32 %v274_v51, 16  ;;  %vm218_vm13 = vcmp.eq.f32.partialorder %v1348_v55, 1.0 }
  0x24   : > { %255 = vadd.xlane.f32.xlu1 %v252_v41  ;;  %v287_v61 = vadd.s32 %v230_v59, %v229_v53  ;;  %v1356_v62 = vsel %vm1257_vm0, %v158_v52, -1.0  ;;  %v275_v63 = vand.u32 65535, %v274_v51  ;;  %v231_v0 = vsel %vm217_vm12, 1, %v1212_v18 }
  0x25   : > { %242 = vadd.xlane.f32.xlu0 %v239_v50  ;;  %v232_v1 = vsel %vm218_vm13, 1, %v1212_v18  ;;  %v1362_v2 = vsel %vm1268_vm1, %v159_v56, -1.0  ;;  %vm219_vm14 = vcmp.eq.f32.partialorder %v1356_v62, 1.0  ;;  %v278_v3 = vcvt.s32.f32 %v276_v60 }
  0x26   : > { %vm220_vm15 = vcmp.eq.f32.partialorder %v1362_v2, 1.0  ;;  %v289_v4 = vshrl.u32 %v287_v61, 16  ;;  %v300_v5 = vadd.s32 %v232_v1, %v231_v0  ;;  %v277_v6 = vcvt.s32.f32 %v275_v63 }
  0x27   : > { %v288_v7 = vand.u32 65535, %v287_v61  ;;  %v233_v9 = vsel %vm219_vm14, 1, %v1212_v18  ;;  %v234_v12 = vsel %vm220_vm15, 1, %v1212_v18  ;;  %vm349_vm0 = vcmp.eq.f32.partialorder %v1275_v10, 2.0 }
  0x28   : > { %268 = vadd.xlane.f32.xlu1 %v265_v57  ;;  %vm350_vm1 = vcmp.eq.f32.partialorder %v1279_v11, 2.0  ;;  %vm347_vm2 = vcmp.eq.f32.partialorder %v1284_v13, 2.0  ;;  %vm348_vm3 = vcmp.eq.f32.partialorder %v1292_v16, 2.0  ;;  %v291_v8 = vcvt.s32.f32 %v289_v4 }
  0x29   : > { %266 = vadd.xlane.f32.xlu0 %v264_v58  ;;  %v302_v14 = vshrl.u32 %v300_v5, 16  ;;  %v313_v15 = vadd.s32 %v234_v12, %v233_v9  ;;  %v290_v17 = vcvt.s32.f32 %v288_v7  ;;  %v301_v19 = vand.u32 65535, %v300_v5 }
  0x2a   : > { %v363_v20 = vsel %vm349_vm0, 1, %v1212_v18  ;;  %v364_v21 = vsel %vm350_vm1, 1, %v1212_v18  ;;  %v361_v22 = vsel %vm347_vm2, 1, %v1212_v18  ;;  %v362_v23 = vsel %vm348_vm3, 1, %v1212_v18 }
  0x2b   : > { %vm353_vm4 = vcmp.eq.f32.partialorder %v1314_v28, 2.0  ;;  %vm354_vm5 = vcmp.eq.f32.partialorder %v1320_v36, 2.0  ;;  %vm351_vm6 = vcmp.eq.f32.partialorder %v1303_v24, 2.0  ;;  %vm352_vm7 = vcmp.eq.f32.partialorder %v1307_v25, 2.0 }
  0x2c   : > { %281 = vadd.xlane.f32.xlu1 %v278_v3  ;;  %v304_v26 = vcvt.s32.f32 %v302_v14  ;;  %v315_v27 = vshrl.u32 %v313_v15, 16  ;;  %v314_v29 = vand.u32 65535, %v313_v15  ;;  %v1380_v30 = vadd.s32 %v364_v21, %v363_v20 }
  0x2d   : > { %279 = vadd.xlane.f32.xlu0 %v277_v6  ;;  %v303_v31 = vcvt.s32.f32 %v301_v19  ;;  %v1382_v32 = vadd.s32 %v362_v23, %v361_v22  ;;  %v367_v33 = vsel %vm353_vm4, 1, %v1212_v18  ;;  %v368_v34 = vsel %vm354_vm5, 1, %v1212_v18 }
  0x2e   : > { %v365_v35 = vsel %vm351_vm6, 1, %v1212_v18  ;;  %v366_v37 = vsel %vm352_vm7, 1, %v1212_v18  ;;  %vm357_vm8 = vcmp.eq.f32.partialorder %v1344_v54, 2.0  ;;  %vm358_vm9 = vcmp.eq.f32.partialorder %v1348_v55, 2.0 }
  0x2f   : > { %vm355_vm10 = vcmp.eq.f32.partialorder %v1332_v48, 2.0  ;;  %vm356_vm11 = vcmp.eq.f32.partialorder %v1336_v49, 2.0  ;;  %v317_v38 = vcvt.s32.f32 %v315_v27  ;;  %v316_v39 = vcvt.s32.f32 %v314_v29 }
  0x30   : > { %294 = vadd.xlane.f32.xlu1 %v291_v8  ;;  %v390_v40 = vshrl.u32 %v1380_v30, 16  ;;  %v1393_v41 = vadd.s32 %v368_v34, %v367_v33  ;;  %v377_v42 = vshrl.u32 %v1382_v32, 16  ;;  %v401_v43 = vadd.s32 %v366_v37, %v365_v35 }
  0x31   : > { %292 = vadd.xlane.f32.xlu0 %v290_v17  ;;  %v371_v44 = vsel %vm357_vm8, 1, %v1212_v18  ;;  %v372_v45 = vsel %vm358_vm9, 1, %v1212_v18  ;;  %v369_v46 = vsel %vm355_vm10, 1, %v1212_v18  ;;  %v370_v47 = vsel %vm356_vm11, 1, %v1212_v18 }
  0x32   : > { %vm359_vm12 = vcmp.eq.f32.partialorder %v1356_v62, 2.0  ;;  %vm360_vm13 = vcmp.eq.f32.partialorder %v1362_v2, 2.0  ;;  %v392_v50 = vcvt.s32.f32 %v390_v40  ;;  %v416_v51 = vshrl.u32 %v1393_v41, 16 }
  0x33   : > { %v440_v52 = vadd.s32 %v372_v45, %v371_v44  ;;  %v379_v53 = vcvt.s32.f32 %v377_v42  ;;  %v403_v56 = vshrl.u32 %v401_v43, 16  ;;  %v427_v57 = vadd.s32 %v370_v47, %v369_v46 }
  0x34   : > { %307 = vadd.xlane.f32.xlu1 %v304_v26  ;;  %v373_v58 = vsel %vm359_vm12, 1, %v1212_v18  ;;  %v374_v59 = vsel %vm360_vm13, 1, %v1212_v18  ;;  %v418_v60 = vcvt.s32.f32 %v416_v51  ;;  %vm489_vm14 = vcmp.eq.f32.partialorder %v1275_v10, 3.0 }
  0x35   : > { %305 = vadd.xlane.f32.xlu0 %v303_v31  ;;  %v442_v61 = vshrl.u32 %v440_v52, 16  ;;  %vm490_vm15 = vcmp.eq.f32.partialorder %v1279_v11, 3.0  ;;  %v405_v63 = vcvt.s32.f32 %v403_v56  ;;  %v429_v0 = vshrl.u32 %v427_v57, 16 }
  0x36   : > { %v453_v1 = vadd.s32 %v374_v59, %v373_v58  ;;  %vm487_vm0 = vcmp.eq.f32.partialorder %v1284_v13, 3.0  ;;  %vm488_vm1 = vcmp.eq.f32.partialorder %v1292_v16, 3.0  ;;  %v503_v3 = vsel %vm489_vm14, 1, %v1212_v18 }
  0x37   : > { %v504_v4 = vsel %vm490_vm15, 1, %v1212_v18  ;;  %v444_v5 = vcvt.s32.f32 %v442_v61  ;;  %v376_v6 = vand.u32 65535, %v1382_v32  ;;  %v431_v7 = vcvt.s32.f32 %v429_v0 }
  0x38   : > { %320 = vadd.xlane.f32.xlu1 %v317_v38  ;;  %v455_v9 = vshrl.u32 %v453_v1, 16  ;;  %v501_v12 = vsel %vm487_vm0, 1, %v1212_v18  ;;  %v502_v8 = vsel %vm488_vm1, 1, %v1212_v18  ;;  %v402_v14 = vand.u32 65535, %v401_v43 }
  0x39   : > { %318 = vadd.xlane.f32.xlu0 %v316_v39  ;;  %v1414_v15 = vadd.s32 %v504_v4, %v503_v3  ;;  %vm493_vm2 = vcmp.eq.f32.partialorder %v1314_v28, 3.0  ;;  %vm494_vm3 = vcmp.eq.f32.partialorder %v1320_v36, 3.0  ;;  %v389_v17 = vand.u32 65535, %v1380_v30 }
  0x3a   : > { %v428_v19 = vand.u32 65535, %v427_v57  ;;  %v415_v20 = vand.u32 65535, %v1393_v41  ;;  %v441_v21 = vand.u32 65535, %v440_v52  ;;  %v378_v22 = vcvt.s32.f32 %v376_v6 }
  0x3b   : > { %v454_v23 = vand.u32 65535, %v453_v1  ;;  %v1420_v26 = vadd.s32 %v502_v8, %v501_v12  ;;  %v457_v27 = vcvt.s32.f32 %v455_v9  ;;  %v507_v29 = vsel %vm493_vm2, 1, %v1212_v18 }
  0x3c   : > { %395 = vadd.xlane.f32.xlu1 %v392_v50  ;;  %v508_v31 = vsel %vm494_vm3, 1, %v1212_v18  ;;  %vm491_vm4 = vcmp.eq.f32.partialorder %v1303_v24, 3.0  ;;  %v404_v32 = vcvt.s32.f32 %v402_v14  ;;  %v530_v30 = vshrl.u32 %v1414_v15, 16 }
  0x3d   : > { %382 = vadd.xlane.f32.xlu0 %v379_v53  ;;  %vm492_vm5 = vcmp.eq.f32.partialorder %v1307_v25, 3.0  ;;  %v391_v33 = vcvt.s32.f32 %v389_v17  ;;  %v430_v34 = vcvt.s32.f32 %v428_v19  ;;  %v417_v35 = vcvt.s32.f32 %v415_v20 }
  0x3e   : > { %v443_v37 = vcvt.s32.f32 %v441_v21  ;;  %v456_v38 = vcvt.s32.f32 %v454_v23  ;;  %v517_v39 = vshrl.u32 %v1420_v26, 16  ;;  %v1428_v40 = vadd.s32 %v508_v31, %v507_v29 }
  0x3f   : > { %v505_v41 = vsel %vm491_vm4, 1, %v1212_v18  ;;  %v506_v42 = vsel %vm492_vm5, 1, %v1212_v18  ;;  %vm497_vm6 = vcmp.eq.f32.partialorder %v1344_v54, 3.0  ;;  %vm629_vm7 = vcmp.eq.f32.partialorder %v1275_v10, 4.0 }
  0x40   : > { %421 = vadd.xlane.f32.xlu1 %v418_v60  ;;  %vm630_vm8 = vcmp.eq.f32.partialorder %v1279_v11, 4.0  ;;  %v532_v43 = vcvt.s32.f32 %v530_v30  ;;  %vm498_vm9 = vcmp.eq.f32.partialorder %v1348_v55, 3.0  ;;  %v643_v44 = vsel %vm629_vm7, 1, %v1212_v18 }
  0x41   : > { %408 = vadd.xlane.f32.xlu0 %v405_v63  ;;  %v644_v45 = vsel %vm630_vm8, 1, %v1212_v18  ;;  %vm627_vm10 = vcmp.eq.f32.partialorder %v1284_v13, 4.0  ;;  %vm628_vm11 = vcmp.eq.f32.partialorder %v1292_v16, 4.0  ;;  %vm633_vm12 = vcmp.eq.f32.partialorder %v1314_v28, 4.0 }
  0x42   : > { %v1438_v46 = vadd.s32 %v644_v45, %v643_v44  ;;  %v641_v10 = vsel %vm627_vm10, 1, %v1212_v18  ;;  %v642_v11 = vsel %vm628_vm11, 1, %v1212_v18  ;;  %vm634_vm13 = vcmp.eq.f32.partialorder %v1320_v36, 4.0 }
  0x43   : > { %v647_v47 = vsel %vm633_vm12, 1, %v1212_v18  ;;  %v1447_v50 = vadd.s32 %v506_v42, %v505_v41  ;;  %v1449_v51 = vadd.s32 %v642_v11, %v641_v10  ;;  %v648_v13 = vsel %vm634_vm13, 1, %v1212_v18 }
  0x44   : > { %447 = vadd.xlane.f32.xlu1 %v444_v5  ;;  %vm631_vm14 = vcmp.eq.f32.partialorder %v1303_v24, 4.0  ;;  %v1453_v16 = vadd.s32 %v648_v13, %v647_v47  ;;  %vm632_vm15 = vcmp.eq.f32.partialorder %v1307_v25, 4.0  ;;  %vm637_vm0 = vcmp.eq.f32.partialorder %v1344_v54, 4.0 }
  0x45   : > { %434 = vadd.xlane.f32.xlu0 %v431_v7  ;;  %v645_v28 = vsel %vm631_vm14, 1, %v1212_v18  ;;  %vm495_vm1 = vcmp.eq.f32.partialorder %v1332_v48, 3.0  ;;  %vm496_vm2 = vcmp.eq.f32.partialorder %v1336_v49, 3.0  ;;  %v646_v36 = vsel %vm632_vm15, 1, %v1212_v18 }
  0x46   : > { %vm638_vm3 = vcmp.eq.f32.partialorder %v1348_v55, 4.0  ;;  %v511_v24 = vsel %vm497_vm6, 1, %v1212_v18  ;;  %v1465_v52 = vadd.s32 %v646_v36, %v645_v28  ;;  %v651_v25 = vsel %vm637_vm0, 1, %v1212_v18 }
  0x47   : > { %v652_v53 = vsel %vm638_vm3, 1, %v1212_v18  ;;  %v512_v56 = vsel %vm498_vm9, 1, %v1212_v18  ;;  %vm635_vm4 = vcmp.eq.f32.partialorder %v1332_v48, 4.0  ;;  %vm636_vm5 = vcmp.eq.f32.partialorder %v1336_v49, 4.0 }
  0x48   : > { %380 = vadd.xlane.f32.xlu1 %v378_v22  ;;  %v1472_v57 = vadd.s32 %v652_v53, %v651_v25  ;;  %v509_v54 = vsel %vm495_vm1, 1, %v1212_v18  ;;  %v510_v58 = vsel %vm496_vm2, 1, %v1212_v18  ;;  %v649_v59 = vsel %vm635_vm4, 1, %v1212_v18 }
  0x49   : > { %460 = vadd.xlane.f32.xlu0 %v457_v27  ;;  %v650_v60 = vsel %vm636_vm5, 1, %v1212_v18  ;;  %vm499_vm6 = vcmp.eq.f32.partialorder %v1356_v62, 3.0  ;;  %vm500_vm7 = vcmp.eq.f32.partialorder %v1362_v2, 3.0  ;;  %vm639_vm8 = vcmp.eq.f32.partialorder %v1356_v62, 4.0 }
  0x4a   : > { %v1482_v55 = vadd.s32 %v650_v60, %v649_v59  ;;  %v556_v48 = vshrl.u32 %v1428_v40, 16  ;;  %v580_v49 = vadd.s32 %v512_v56, %v511_v24  ;;  %vm640_vm9 = vcmp.eq.f32.partialorder %v1362_v2, 4.0 }
  0x4b   : > { %v653_v61 = vsel %vm639_vm8, 1, %v1212_v18  ;;  %v519_v63 = vcvt.s32.f32 %v517_v39  ;;  %v543_v0 = vshrl.u32 %v1447_v50, 16  ;;  %v567_v1 = vadd.s32 %v510_v58, %v509_v54 }
  0x4c   : > { %406 = vadd.xlane.f32.xlu1 %v404_v32  ;;  %v654_v3 = vsel %vm640_vm9, 1, %v1212_v18  ;;  %v513_v4 = vsel %vm499_vm6, 1, %v1212_v18  ;;  %v514_v5 = vsel %vm500_vm7, 1, %v1212_v18  ;;  %v558_v6 = vcvt.s32.f32 %v556_v48 }
  0x4d   : > { %393 = vadd.xlane.f32.xlu0 %v391_v33  ;;  %v1492_v62 = vadd.s32 %v654_v3, %v653_v61  ;;  %v582_v7 = vshrl.u32 %v580_v49, 16  ;;  %v545_v2 = vcvt.s32.f32 %v543_v0  ;;  %v569_v9 = vshrl.u32 %v567_v1, 16 }
  0x4e   : > { %v593_v12 = vadd.s32 %v514_v5, %v513_v4  ;;  %v516_v14 = vand.u32 65535, %v1420_v26  ;;  %v542_v21 = vand.u32 65535, %v1447_v50  ;;  %v529_v23 = vand.u32 65535, %v1414_v15 }
  0x4f   : > { %v584_v8 = vcvt.s32.f32 %v582_v7  ;;  %v571_v17 = vcvt.s32.f32 %v569_v9  ;;  %v568_v29 = vand.u32 65535, %v567_v1  ;;  %v555_v32 = vand.u32 65535, %v1428_v40 }
  0x50   : > { %432 = vadd.xlane.f32.xlu1 %v430_v34  ;;  %v595_v19 = vshrl.u32 %v593_v12, 16  ;;  %v518_v20 = vcvt.s32.f32 %v516_v14  ;;  %v544_v27 = vcvt.s32.f32 %v542_v21  ;;  %v531_v31 = vcvt.s32.f32 %v529_v23 }
  0x51   : > { %419 = vadd.xlane.f32.xlu0 %v417_v35  ;;  %v570_v26 = vcvt.s32.f32 %v568_v29  ;;  %v594_v30 = vand.u32 65535, %v593_v12  ;;  %v557_v33 = vcvt.s32.f32 %v555_v32  ;;  %v581_v34 = vand.u32 65535, %v580_v49 }
  0x52   : > { %v597_v22 = vcvt.s32.f32 %v595_v19  ;;  %v657_v15 = vshrl.u32 %v1449_v51, 16  ;;  %v696_v41 = vshrl.u32 %v1453_v16, 16  ;;  %v683_v42 = vshrl.u32 %v1465_v52, 16 }
  0x53   : > { %v596_v35 = vcvt.s32.f32 %v594_v30  ;;  %v722_v44 = vshrl.u32 %v1472_v57, 16  ;;  %v709_v10 = vshrl.u32 %v1482_v55, 16  ;;  %v656_v47 = vand.u32 65535, %v1449_v51 }
  0x54   : > { %458 = vadd.xlane.f32.xlu1 %v456_v38  ;;  %v583_v38 = vcvt.s32.f32 %v581_v34  ;;  %v659_v40 = vcvt.s32.f32 %v657_v15  ;;  %v685_v45 = vcvt.s32.f32 %v683_v42  ;;  %v735_v13 = vshrl.u32 %v1492_v62, 16 }
  0x55   : > { %445 = vadd.xlane.f32.xlu0 %v443_v37  ;;  %v670_v37 = vshrl.u32 %v1438_v46, 16  ;;  %v724_v11 = vcvt.s32.f32 %v722_v44  ;;  %v711_v50 = vcvt.s32.f32 %v709_v10  ;;  %v658_v28 = vcvt.s32.f32 %v656_v47 }
  0x56   : > { %v682_v36 = vand.u32 65535, %v1465_v52  ;;  %v737_v24 = vcvt.s32.f32 %v735_v13  ;;  %v669_v25 = vand.u32 65535, %v1438_v46  ;;  %v708_v56 = vand.u32 65535, %v1482_v55 }
  0x57   : > { %v672_v39 = vcvt.s32.f32 %v670_v37  ;;  %v695_v51 = vand.u32 65535, %v1453_v16  ;;  %v734_v59 = vand.u32 65535, %v1492_v62  ;;  %v721_v52 = vand.u32 65535, %v1472_v57 }
  0x58   : > { %535 = vadd.xlane.f32.xlu1 %v532_v43  ;;  %v698_v43 = vcvt.s32.f32 %v696_v41  ;;  %v684_v53 = vcvt.s32.f32 %v682_v36  ;;  %v671_v54 = vcvt.s32.f32 %v669_v25  ;;  %v710_v58 = vcvt.s32.f32 %v708_v56 }
  0x59   : > { %522 = vadd.xlane.f32.xlu0 %v519_v63  ;;  %v697_v60 = vcvt.s32.f32 %v695_v51  ;;  %v736_v48 = vcvt.s32.f32 %v734_v59  ;;  %v723_v46 = vcvt.s32.f32 %v721_v52  ;;  %vm760_vm8 = vcmask 7168  }
  0x5c   : > { %561 = vadd.xlane.f32.xlu1 %v558_v6 }
  0x5d   : > { %548 = vadd.xlane.f32.xlu0 %v545_v2 }
  0x60   : > { %587 = vadd.xlane.f32.xlu1 %v584_v8 }
  0x61   : > { %574 = vadd.xlane.f32.xlu0 %v571_v17 }
  0x64   : > { %520 = vadd.xlane.f32.xlu1 %v518_v20 }
  0x65   : > { %600 = vadd.xlane.f32.xlu0 %v597_v22 }
  0x68   : > { %546 = vadd.xlane.f32.xlu1 %v544_v27 }
  0x69   : > { %533 = vadd.xlane.f32.xlu0 %v531_v31 }
  0x6c   : > { %572 = vadd.xlane.f32.xlu1 %v570_v26 }
  0x6d   : > { %559 = vadd.xlane.f32.xlu0 %v557_v33 }
  0x70   : > { %598 = vadd.xlane.f32.xlu1 %v596_v35 }
  0x71   : > { %585 = vadd.xlane.f32.xlu0 %v583_v38 }
  0x74   : > { %675 = vadd.xlane.f32.xlu1 %v672_v39 }
  0x75   : > { %662 = vadd.xlane.f32.xlu0 %v659_v40 }
  0x78   : > { %701 = vadd.xlane.f32.xlu1 %v698_v43 }
  0x79   : > { %688 = vadd.xlane.f32.xlu0 %v685_v45 }
  0x7c   : > { %727 = vadd.xlane.f32.xlu1 %v724_v11 }
  0x7d   : > { %714 = vadd.xlane.f32.xlu0 %v711_v50 }
  0x80   : > { %660 = vadd.xlane.f32.xlu1 %v658_v28 }
  0x81   : > { %740 = vadd.xlane.f32.xlu0 %v737_v24 }
  0x84   : > { %686 = vadd.xlane.f32.xlu1 %v684_v53 }
  0x85   : > { %673 = vadd.xlane.f32.xlu0 %v671_v54 }
  0x88   : > { %712 = vadd.xlane.f32.xlu1 %v710_v58 }
  0x89   : > { %699 = vadd.xlane.f32.xlu0 %v697_v60 }
  0x8c   : > { %738 = vadd.xlane.f32.xlu1 %v736_v48 }
  0x8d   : > { %725 = vadd.xlane.f32.xlu0 %v723_v46 }
  0xad   : > { %v254_v49 = vpop.xlane.xlu1 %253 }
  0xae   : > { %v241_v55 = vpop.xlane.xlu0 %240  ;;  %v257_v1 = vcvt.f32.s32 %v254_v49 }
  0xaf   : > { %v244_v4 = vcvt.f32.s32 %v241_v55 }
  0xb1   : > { %v256_v61 = vpop.xlane.xlu1 %255 }
  0xb2   : > { %v258_v63 = vcvt.f32.s32 %v256_v61  ;;  %v243_v0 = vpop.xlane.xlu0 %242 }
  0xb3   : > { %v245_v16 = vcvt.f32.s32 %v243_v0 }
  0xb4   : > { %v259_v3 = vshll.u32 %v258_v63, 16 }
  0xb5   : > { %v246_v5 = vshll.u32 %v245_v16, 16  ;;  %v269_v62 = vpop.xlane.xlu1 %268 }
  0xb6   : > { %v260_v6 = vadd.s32 %v259_v3, %v257_v1  ;;  %v271_v7 = vcvt.f32.s32 %v269_v62  ;;  %v267_v57 = vpop.xlane.xlu0 %266 }
  0xb7   : > { %v1512_v2 = vadd.s32 %v246_v5, %v244_v4  ;;  %v270_v12 = vcvt.f32.s32 %v267_v57 }
  0xb8   : > { %v272_v9 = vshll.u32 %v271_v7, 16  ;;  %vm327_vm10 = vcmp.gt.s32.totalorder %v260_v6, 0 }
  0xb9   : > { %v282_v8 = vpop.xlane.xlu1 %281  ;;  %v334_v59 = vsel %vm327_vm10, %v260_v6, 0  ;;  %v341_v60 = vsel %vm327_vm10, 1, %v1212_v18  ;;  %vm326_vm2 = vcmp.gt.s32.totalorder %v1512_v2, 0 }
  0xba   : > { %v1514_v14 = vadd.s32 %v272_v9, %v270_v12  ;;  %v284_v17 = vcvt.f32.s32 %v282_v8  ;;  %v280_v19 = vpop.xlane.xlu0 %279 }
  0xbb   : > { %v283_v21 = vcvt.f32.s32 %v280_v19 }
  0xbc   : > { %v285_v20 = vshll.u32 %v284_v17, 16  ;;  %vm328_vm4 = vcmp.gt.s32.totalorder %v1514_v14, 0 }
  0xbd   : > { %v295_v22 = vpop.xlane.xlu1 %294 }
  0xbe   : > { %v286_v23 = vadd.s32 %v285_v20, %v283_v21  ;;  %v297_v27 = vcvt.f32.s32 %v295_v22  ;;  %v293_v29 = vpop.xlane.xlu0 %292 }
  0xbf   : > { %v296_v32 = vcvt.f32.s32 %v293_v29 }
  0xc0   : > { %v298_v31 = vshll.u32 %v297_v27, 16  ;;  %vm329_vm11 = vcmp.gt.s32.totalorder %v286_v23, 0 }
  0xc1   : > { %v308_v26 = vpop.xlane.xlu1 %307  ;;  %v336_v16 = vsel %vm329_vm11, %v286_v23, 0  ;;  %v343_v1 = vsel %vm329_vm11, 1, %v1212_v18 }
  0xc2   : > { %v1516_v30 = vadd.s32 %v298_v31, %v296_v32  ;;  %v310_v33 = vcvt.f32.s32 %v308_v26  ;;  %v306_v34 = vpop.xlane.xlu0 %305 }
  0xc3   : > { %v309_v37 = vcvt.f32.s32 %v306_v34 }
  0xc4   : > { %v311_v35 = vshll.u32 %v310_v33, 16  ;;  %vm330_vm5 = vcmp.gt.s32.totalorder %v1516_v30, 0 }
  0xc5   : > { %v321_v38 = vpop.xlane.xlu1 %320 }
  0xc6   : > { %v312_v15 = vadd.s32 %v311_v35, %v309_v37  ;;  %v323_v39 = vcvt.f32.s32 %v321_v38  ;;  %v319_v41 = vpop.xlane.xlu0 %318 }
  0xc7   : > { %v322_v42 = vcvt.f32.s32 %v319_v41 }
  0xc8   : > { %v324_v40 = vshll.u32 %v323_v39, 16  ;;  %vm331_vm13 = vcmp.gt.s32.totalorder %v312_v15, 0 }
  0xc9   : > { %v396_v43 = vpop.xlane.xlu1 %395  ;;  %v338_v9 = vsel %vm331_vm13, %v312_v15, 0  ;;  %v345_v8 = vsel %vm331_vm13, 1, %v1212_v18 }
  0xca   : > { %v1518_v44 = vadd.s32 %v324_v40, %v322_v42  ;;  %v1520_v45 = vpop.xlane.xlu0 %382  ;;  %v398_v36 = vcvt.f32.s32 %v396_v43 }
  0xcc   : > { %v399_v53 = vshll.u32 %v398_v36, 16  ;;  %v385_v36 = vcvt.f32.s32 %v1520_v45  ;;  %vm332_vm6 = vcmp.gt.s32.totalorder %v1518_v44, 0 }
  0xcd   : > { %v422_v10 = vpop.xlane.xlu1 %421 }
  0xce   : > { %v1522_v11 = vpop.xlane.xlu0 %408  ;;  %v424_v56 = vcvt.f32.s32 %v422_v10 }
  0xd0   : > { %v425_v48 = vshll.u32 %v424_v56, 16  ;;  %v411_v56 = vcvt.f32.s32 %v1522_v11 }
  0xd1   : > { %v448_v47 = vpop.xlane.xlu1 %447 }
  0xd2   : > { %v1524_v50 = vpop.xlane.xlu0 %434  ;;  %v450_v46 = vcvt.f32.s32 %v448_v47 }
  0xd3   : > { %v437_v45 = vcvt.f32.s32 %v1524_v50 }
  0xd4   : > { %v451_v4 = vshll.u32 %v450_v46, 16  ;;  %v386_v46 = vshll.u32 %v385_v36, 16 }
  0xd5   : > { %v1526_v13 = vpop.xlane.xlu1 %380 }
  0xd6   : > { %v1528_v28 = vpop.xlane.xlu0 %460 }
  0xd9   : > { %v1530_v24 = vpop.xlane.xlu1 %406 }
  0xda   : > { %v394_v25 = vpop.xlane.xlu0 %393 }
  0xdb   : > { %v397_v54 = vcvt.f32.s32 %v394_v25 }
  0xdd   : > { %v400_v51 = vadd.s32 %v399_v53, %v397_v54  ;;  %v1532_v58 = vpop.xlane.xlu1 %432 }
  0xde   : > { %v420_v52 = vpop.xlane.xlu0 %419 }
  0xdf   : > { %vm467_vm12 = vcmp.gt.s32.totalorder %v400_v51, %v334_v59  ;;  %v423_v49 = vcvt.f32.s32 %v420_v52  ;;  %v410_v52 = vcvt.f32.s32 %v1530_v24 }
  0xe0   : > { %v481_v55 = vsel %vm467_vm12, 2, %v341_v60  ;;  %v1535_v61 = vsel %vm467_vm12, %v400_v51, %v334_v59  ;;  %v384_v51 = vcvt.f32.s32 %v1526_v13 }
  0xe1   : > { %v426_v63 = vadd.s32 %v425_v48, %v423_v49  ;;  %v1537_v0 = vpop.xlane.xlu1 %458  ;;  %v412_v49 = vshll.u32 %v411_v56, 16 }
  0xe2   : > { %v446_v3 = vpop.xlane.xlu0 %445  ;;  %v387_v50 = vadd.s32 %v386_v46, %v384_v51 }
  0xe3   : > { %vm469_vm14 = vcmp.gt.s32.totalorder %v426_v63, %v336_v16  ;;  %v449_v5 = vcvt.f32.s32 %v446_v3  ;;  %v463_v3 = vcvt.f32.s32 %v1528_v28  ;;  %v462_v28 = vcvt.f32.s32 %v1537_v0 }
  0xe4   : > { %v483_v62 = vsel %vm469_vm14, 2, %v343_v1  ;;  %v1540_v6 = vsel %vm469_vm14, %v426_v63, %v336_v16  ;;  %v333_v16 = vsel %vm326_vm2, %v1512_v2, 0  ;;  %v438_v1 = vshll.u32 %v437_v45, 16 }
  0xe5   : > { %v452_v7 = vadd.s32 %v451_v4, %v449_v5  ;;  %v536_v57 = vpop.xlane.xlu1 %535  ;;  %v413_v4 = vadd.s32 %v412_v49, %v410_v52  ;;  %v340_v5 = vsel %vm326_vm2, 1, %v1212_v18  ;;  %v342_v2 = vsel %vm328_vm4, 1, %v1212_v18 }
  0xe6   : > { %v523_v12 = vpop.xlane.xlu0 %522  ;;  %v538_v31 = vcvt.f32.s32 %v536_v57  ;;  %v335_v57 = vsel %vm328_vm4, %v1514_v14, 0  ;;  %vm466_vm7 = vcmp.gt.s32.totalorder %v387_v50, %v333_v16  ;;  %v344_v14 = vsel %vm330_vm5, 1, %v1212_v18 }
  0xe7   : > { %vm471_vm15 = vcmp.gt.s32.totalorder %v452_v7, %v338_v9  ;;  %v525_v11 = vcvt.f32.s32 %v523_v12  ;;  %vm468_vm9 = vcmp.gt.s32.totalorder %v413_v4, %v335_v57 }
  0xe8   : > { %v485_v17 = vsel %vm471_vm15, 2, %v345_v8  ;;  %v1543_v19 = vsel %vm471_vm15, %v452_v7, %v338_v9  ;;  %v539_v33 = vshll.u32 %v538_v31, 16 }
  0xe9   : > { %v562_v20 = vpop.xlane.xlu1 %561 }
  0xea   : > { %v1545_v21 = vpop.xlane.xlu0 %548  ;;  %v564_v34 = vcvt.f32.s32 %v562_v20  ;;  %v1621_v20 = vsel %vm330_vm5, %v1516_v30, 0  ;;  %v482_v30 = vsel %vm468_vm9, 2, %v342_v2 }
  0xeb   : > { %v551_v7 = vcvt.f32.s32 %v1545_v21  ;;  %v464_v21 = vshll.u32 %v463_v3, 16 }
  0xec   : > { %v565_v39 = vshll.u32 %v564_v34, 16  ;;  %v473_v34 = vsel %vm466_vm7, %v387_v50, %v333_v16 }
  0xed   : > { %v588_v22 = vpop.xlane.xlu1 %587  ;;  %v552_v31 = vshll.u32 %v551_v7, 16 }
  0xee   : > { %v1547_v23 = vpop.xlane.xlu0 %574  ;;  %v590_v41 = vcvt.f32.s32 %v588_v22 }
  0xf0   : > { %v591_v25 = vshll.u32 %v590_v41, 16  ;;  %v475_v41 = vsel %vm468_vm9, %v413_v4, %v335_v57 }
  0xf1   : > { %v521_v27 = vpop.xlane.xlu1 %520 }
  0xf2   : > { %v1549_v29 = vpop.xlane.xlu0 %600  ;;  %v524_v24 = vcvt.f32.s32 %v521_v27  ;;  %v1630_v27 = vsel %vm332_vm6, %v1518_v44, 0 }
  0xf5   : > { %v1551_v32 = vpop.xlane.xlu1 %546 }
  0xf6   : > { %v534_v26 = vpop.xlane.xlu0 %533  ;;  %v550_v8 = vcvt.f32.s32 %v1551_v32  ;;  %v577_v32 = vcvt.f32.s32 %v1547_v23 }
  0xf7   : > { %v537_v35 = vcvt.f32.s32 %v534_v26  ;;  %v480_v26 = vsel %vm466_vm7, 2, %v340_v5 }
  0xf9   : > { %v1553_v37 = vadd.s32 %v539_v33, %v537_v35  ;;  %v1555_v38 = vpop.xlane.xlu1 %572  ;;  %v1636_v33 = vadd.s32 %v464_v21, %v462_v28  ;;  %v553_v35 = vadd.s32 %v552_v31, %v550_v8 }
  0xfa   : > { %v560_v15 = vpop.xlane.xlu0 %559 }
  0xfb   : > { %vm607_vm0 = vcmp.gt.s32.totalorder %v1553_v37, %v1535_v61  ;;  %v563_v40 = vcvt.f32.s32 %v560_v15  ;;  %v576_v15 = vcvt.f32.s32 %v1555_v38  ;;  %vm472_vm12 = vcmp.gt.s32.totalorder %v1636_v33, %v1630_v27 }
  0xfc   : > { %v1562_v42 = vsel %vm607_vm0, 3, %v481_v55  ;;  %v436_v55 = vcvt.f32.s32 %v1532_v58  ;;  %vm608_vm13 = vcmp.gt.s32.totalorder %v553_v35, %v475_v41 }
  0xfd   : > { %v1564_v43 = vadd.s32 %v565_v39, %v563_v40  ;;  %v1566_v10 = vpop.xlane.xlu1 %598  ;;  %v622_v4 = vsel %vm608_vm13, 3, %v482_v30 }
  0xfe   : > { %v586_v47 = vpop.xlane.xlu0 %585  ;;  %v1609_v9 = vadd.s32 %v438_v1, %v436_v55 }
  0xff   : > { %vm609_vm1 = vcmp.gt.s32.totalorder %v1564_v43, %v1540_v6  ;;  %v589_v53 = vcvt.f32.s32 %v586_v47 }
 0x100   : > { %v1575_v54 = vsel %vm609_vm1, 3, %v483_v62  ;;  %v526_v62 = vshll.u32 %v525_v11, 16  ;;  %vm470_vm10 = vcmp.gt.s32.totalorder %v1609_v9, %v1621_v20 }
 0x101   : > { %v1578_v59 = vadd.s32 %v591_v25, %v589_v53  ;;  %v1580_v60 = vpop.xlane.xlu1 %675  ;;  %v578_v25 = vshll.u32 %v577_v32, 16  ;;  %v603_v53 = vcvt.f32.s32 %v1549_v29  ;;  %v477_v56 = vsel %vm470_vm10, %v1609_v9, %v1621_v20 }
 0x102   : > { %v663_v48 = vpop.xlane.xlu0 %662  ;;  %v527_v12 = vadd.s32 %v526_v62, %v524_v24  ;;  %v678_v51 = vcvt.f32.s32 %v1580_v60  ;;  %v602_v29 = vcvt.f32.s32 %v1566_v10  ;;  %v615_v10 = vsel %vm608_vm13, %v553_v35, %v475_v41 }
 0x103   : > { %vm611_vm3 = vcmp.gt.s32.totalorder %v1578_v59, %v1543_v19  ;;  %v665_v22 = vcvt.f32.s32 %v663_v48  ;;  %v579_v48 = vadd.s32 %v578_v25, %v576_v15  ;;  %v604_v24 = vshll.u32 %v603_v53, 16 }
 0x104   : > { %v1591_v13 = vsel %vm611_vm3, 3, %v485_v17  ;;  %vm606_vm11 = vcmp.gt.s32.totalorder %v527_v12, %v473_v34  ;;  %v679_v16 = vshll.u32 %v678_v51, 16  ;;  %v616_v9 = vsel %vm609_vm1, %v1564_v43, %v1540_v6 }
 0x105   : > { %v1594_v63 = vpop.xlane.xlu1 %701  ;;  %v666_v23 = vshll.u32 %v665_v22, 16  ;;  %v620_v38 = vsel %vm606_vm11, 3, %v480_v26  ;;  %v613_v45 = vsel %vm606_vm11, %v527_v12, %v473_v34  ;;  %vm610_vm15 = vcmp.gt.s32.totalorder %v579_v48, %v477_v56 }
 0x106   : > { %v689_v58 = vpop.xlane.xlu0 %688  ;;  %v704_v46 = vcvt.f32.s32 %v1594_v63  ;;  %v605_v5 = vadd.s32 %v604_v24, %v602_v29  ;;  %v617_v26 = vsel %vm610_vm15, %v579_v48, %v477_v56  ;;  %v346_v41 = vsel %vm332_vm6, 1, %v1212_v18 }
 0x107   : > { %v691_v40 = vcvt.f32.s32 %v689_v58  ;;  %v614_v58 = vsel %vm607_vm0, %v1553_v37, %v1535_v61  ;;  %v484_v61 = vsel %vm470_vm10, 2, %v344_v14  ;;  %v479_v37 = vsel %vm472_vm12, %v1636_v33, %v1630_v27 }
 0x108   : > { %v705_v62 = vshll.u32 %v704_v46, 16  ;;  %vm612_vm0 = vcmp.gt.s32.totalorder %v605_v5, %v479_v37  ;;  %v618_v18 = vsel %vm611_vm3, %v1578_v59, %v1543_v19 }
 0x109   : > { %v1616_v17 = vpop.xlane.xlu1 %727  ;;  %v692_v49 = vshll.u32 %v691_v40, 16  ;;  %v619_v40 = vsel %vm612_vm0, %v605_v5, %v479_v37 }
 0x10a   : > { %v715_v0 = vpop.xlane.xlu0 %714  ;;  %v730_v21 = vcvt.f32.s32 %v1616_v17  ;;  %v624_v17 = vsel %vm610_vm15, 3, %v484_v61 }
 0x10b   : > { %v717_v55 = vcvt.f32.s32 %v715_v0 }
 0x10c   : > { %v731_v35 = vshll.u32 %v730_v21, 16 }
 0x10d   : > { %v661_v39 = vpop.xlane.xlu1 %660  ;;  %v718_v28 = vshll.u32 %v717_v55, 16 }
 0x10e   : > { %v664_v47 = vcvt.f32.s32 %v661_v39  ;;  %v741_v36 = vpop.xlane.xlu0 %740 }
 0x10f   : > { %v743_v2 = vcvt.f32.s32 %v741_v36 }
 0x110   : > { %v667_v52 = vadd.s32 %v666_v23, %v664_v47  ;;  %v486_v23 = vsel %vm472_vm12, 2, %v346_v41 }
 0x111   : > { %v687_v11 = vpop.xlane.xlu1 %686  ;;  %v744_v34 = vshll.u32 %v743_v2, 16  ;;  %v626_v36 = vsel %vm612_vm0, 3, %v486_v23 }
 0x112   : > { %vm746_vm14 = vcmp.gt.s32.totalorder %v667_v52, %v613_v45  ;;  %v690_v50 = vcvt.f32.s32 %v687_v11  ;;  %v674_v60 = vpop.xlane.xlu0 %673 }
 0x113   : > { %v753_v1 = vsel %vm746_vm14, 4, %v620_v38  ;;  %v677_v3 = vcvt.f32.s32 %v674_v60 }
 0x114   : > { %761 = vst.msk [vmem:[%s1656_s23] sm:$0xff] %vm760_vm8, %v753_v1  ;;  %v693_v63 = vadd.s32 %v692_v49, %v690_v50 }
 0x115   : > { %v680_v7 = vadd.s32 %v679_v16, %v677_v3  ;;  %v713_v57 = vpop.xlane.xlu1 %712 }
 0x116   : > { %vm748_vm2 = vcmp.gt.s32.totalorder %v693_v63, %v615_v10  ;;  %v716_v12 = vcvt.f32.s32 %v713_v57  ;;  %v700_v8 = vpop.xlane.xlu0 %699 }
 0x117   : > { %v755_v22 = vsel %vm748_vm2, 4, %v622_v4  ;;  %vm747_vm4 = vcmp.gt.s32.totalorder %v680_v7, %v614_v58  ;;  %v703_v0 = vcvt.f32.s32 %v700_v8 }
 0x118   : > { %763 = vst.msk [vmem:[%s1656_s23 + $0x10] sm:$0xff] %vm760_vm8, %v755_v22  ;;  %v754_v31 = vsel %vm747_vm4, 4, %v1562_v42  ;;  %v719_v32 = vadd.s32 %v718_v28, %v716_v12 }
 0x119   : > { %762 = vst.msk [vmem:[%s1656_s23 + $0x8] sm:$0xff] %vm760_vm8, %v754_v31  ;;  %v706_v20 = vadd.s32 %v705_v62, %v703_v0  ;;  %v739_v14 = vpop.xlane.xlu1 %738 }
 0x11a   : > { %vm750_vm5 = vcmp.gt.s32.totalorder %v719_v32, %v617_v26  ;;  %v742_v42 = vcvt.f32.s32 %v739_v14  ;;  %v726_v30 = vpop.xlane.xlu0 %725 }
 0x11b   : > { %v757_v15 = vsel %vm750_vm5, 4, %v624_v17  ;;  %vm749_vm7 = vcmp.gt.s32.totalorder %v706_v20, %v616_v9  ;;  %v729_v39 = vcvt.f32.s32 %v726_v30  ;;  %774 = sbr.rel (!%p1248_p4) target bundleno = 351 (0x15f), region = 28 }
 0x11c   : > { %765 = vst.msk [vmem:[%s1656_s23 + $0x20] sm:$0xff] %vm760_vm8, %v757_v15  ;;  %v756_v6 = vsel %vm749_vm7, 4, %v1575_v54  ;;  %v745_v43 = vadd.s32 %v744_v34, %v742_v42 }
 0x11d   : > { %764 = vst.msk [vmem:[%s1656_s23 + $0x18] sm:$0xff] %vm760_vm8, %v756_v6  ;;  %v732_v47 = vadd.s32 %v731_v35, %v729_v39 }
 0x11e   : > { %vm752_vm1 = vcmp.gt.s32.totalorder %v745_v43, %v619_v40 }
 0x11f   : > { %v759_v44 = vsel %vm752_vm1, 4, %v626_v36  ;;  %vm751_vm6 = vcmp.gt.s32.totalorder %v732_v47, %v618_v18 }
 0x120   : > { %767 = vst.msk [vmem:[%s1656_s23 + $0x30] sm:$0xff] %vm760_vm8, %v759_v44  ;;  %v758_v54 = vsel %vm751_vm6, 4, %v1591_v13 }
 0x121   : > { %766 = vst.msk [vmem:[%s1656_s23 + $0x28] sm:$0xff] %vm760_vm8, %v758_v54 }
 0x122   : > { %s1780_s24 = smov (!%p777_p8, %s776_s24), 7 }
 0x123   : > { %s1015_s29 = sshll.u32 %s1780_s24, 7 }
 0x124   : > { %p1018_p9 = scmp.eq.s32.totalorder %s1015_s29, 0 }
 0x125   : > { %1120 = sdivrem.u32 (!%p1018_p9), %s1780_s24, 7 }
 0x126   : > { %785 = sbr.rel (%p1018_p9) target bundleno = 351 (0x15f), region = 32 }
 0x12e   : > { %s1723_s30 = spop.drf %1120 }
 0x12f   : > { %p1019_p10 = scmp.le.s32.totalorder %s1723_s30, 0 }
 0x130   : > { %s1773_s2 = smov (!%p1019_p10), %s1717_s28  ;;  %s1774_s3 = smov (!%p1019_p10), %s1656_s23 }
 0x131   : > { %965 = sbr.rel (%p1019_p10) target bundleno = 322 (0x142), region = 108  ;;  %s1732_s4 = smov (!%p1019_p10), 0  }
 0x132   : > { %s1734_s5 = smov (!%p1019_p10), 0  }
 0x138 LB: >> { %v861_v19 = vld [vmem:[%s1186_s3] sm:$0xff]  ;;  %v863_v59 = vld [vmem:[%s1186_s3 + $0x8] sm:$0xff]  ;;  %v865_v13 = vld [vmem:[%s1186_s3 + $0x10] sm:$0xff]  ;;  %s875_s6 = sadd.s32 1, %s1190_s4  ;;  %s855_s5 = sadd.s32 1, %s1194_s5   ;;  %s1194_s5 = sphi %s1734_s5, %s855_s5   ;;  %s1190_s4 = sphi %s1732_s4, %s1775_s4   ;;  %s1186_s3 = sphi %s1774_s3, %s880_s3   ;;  %s1182_s2 = sphi %s1773_s2, %s881_s2  }
 0x139   : >> { %862 = vst [vmem:[%s1182_s2] sm:$0xff] %v861_v19  ;;  %864 = vst [vmem:[%s1182_s2 + $0x8] sm:$0xff] %v863_v59  ;;  %v867_v27 = vld [vmem:[%s1186_s3 + $0x18] sm:$0xff]  ;;  %v869_v33 = vld [vmem:[%s1186_s3 + $0x20] sm:$0xff]  ;;  %p876_p11 = scmp.ge.s32.totalorder %s875_s6, %s1723_s30  ;;  %p854_p12 = scmp.ge.s32.totalorder %s855_s5, %s1723_s30 }
 0x13a   : >> { %866 = vst [vmem:[%s1182_s2 + $0x10] sm:$0xff] %v865_v13  ;;  %v871_v25 = vld [vmem:[%s1186_s3 + $0x28] sm:$0xff]  ;;  %868 = vst [vmem:[%s1182_s2 + $0x18] sm:$0xff] %v867_v27  ;;  %v873_v53 = vld [vmem:[%s1186_s3 + $0x30] sm:$0xff] }
 0x13b   : >> { %870 = vst [vmem:[%s1182_s2 + $0x20] sm:$0xff] %v869_v33  ;;  %872 = vst [vmem:[%s1182_s2 + $0x28] sm:$0xff] %v871_v25  ;;  %s1782_s6 = smov (%p876_p11, %s875_s6), 0  ;;  %857 = sbr.rel (!%p854_p12) target bundleno = 312 (0x138), region = 114 }
 0x13c   : >> { %874 = vst [vmem:[%s1182_s2 + $0x30] sm:$0xff] %v873_v53  ;;  %s878_s8 = smul.u32 56, %s1782_s6  ;;  %s1775_s4 = smov %s1782_s6 }
 0x13e   : >> { %s880_s3 = scalar_lea.vmem %s1656_s23, %s878_s8 [#allocation2]   ;;  %s881_s2 = scalar_lea.vmem %s1717_s28, %s878_s8  }
 0x142 PF: > { %1122 = sdivrem.u32 %s1780_s24, 7 }
 0x143   : > { %s1020_s9 = smul.u32 56, %s1723_s30 }
 0x145   : > { %s886_s11 = scalar_lea.vmem %s1656_s23, %s1020_s9 [#allocation2]   ;;  %s888_s12 = scalar_lea.vmem %s1717_s28, %s1020_s9  }
 0x14b   : > { %s1123_s14 = spop.drf %1122 }
 0x14c   : > { %p1022_p13 = scmp.le.s32.totalorder %s1123_s14, 0 }
 0x14d   : > { %s1196_s15 = smov (!%p1022_p13), %s888_s12   ;;  %s1200_s16 = smov (!%p1022_p13), %s886_s11  }
 0x14e   : > { %979 = sbr.rel (%p1022_p13) target bundleno = 351 (0x15f), region = 119  ;;  %s1204_s17 = smov (!%p1022_p13), 0  }
 0x14f   : > { %s1208_s18 = smov (!%p1022_p13), 0  }
 0x155 LB: >> { %v898_v56 = vld [vmem:[%s1202_s16] sm:$0xff]  ;;  %s900_s19 = sadd.s32 1, %s1206_s17  ;;  %s892_s18 = sadd.s32 1, %s1210_s18   ;;  %s1210_s18 = sphi %s1208_s18, %s892_s18   ;;  %s1206_s17 = sphi %s1204_s17, %s1205_s17   ;;  %s1202_s16 = sphi %s1200_s16, %s905_s16   ;;  %s1198_s15 = sphi %s1196_s15, %s906_s15  }
 0x156   : >> { %899 = vst [vmem:[%s1198_s15] sm:$0xff] %v898_v56  ;;  %p901_p0 = scmp.ge.s32.totalorder %s900_s19, %s1123_s14  ;;  %p891_p1 = scmp.ge.s32.totalorder %s892_s18, %s1123_s14 }
 0x158   : >> { %s1784_s19 = smov (%p901_p0, %s900_s19), 0  ;;  %894 = sbr.rel (!%p891_p1) target bundleno = 341 (0x155), region = 125 }
 0x159   : >> { %s1023_s20 = sshll.u32 %s1784_s19, 3  ;;  %s1205_s17 = smov %s1784_s19  }
 0x15a   : >> { %s905_s16 = scalar_lea.vmem %s886_s11, %s1023_s20 [#allocation2]   ;;  %s906_s15 = scalar_lea.vmem %s888_s12, %s1023_s20  }
 0x15f PF: > { %p8_p2 = scmp.ge.s32.totalorder %s1238_s10, 6   ;;  %s1776_s6 = smov %s1174_s7 }
 0x160   : > { %s1777_s7 = smov %s1246_s13  ;;  %s1778_s8 = smov %s1238_s10 }
 0x161   :  { %10 = sbr.rel (!%p8_p2) target bundleno = 2 (0x2), region = 136 }

</bundles_post_ra>
